<compile_context>
chip_gen: v7x
topology: tpu7x:2x2x1
jax: 0.10.0
libtpu: 0.0.40
codegen_flags: <defaults>
</compile_context>

<pallas_src>
import jax
import jax.numpy as jnp
from jax.experimental import pallas as pl
from jax.experimental.pallas import tpu as pltpu

LANE = 128
# Per grid step: (6,tile_b) in + (2,tile_b) out, each padded to 8 sublanes and
# double-buffered -> ~128 * tile_b bytes of VMEM.  131072 -> ~16 MiB.
TILE_B_MAX = 131072
_VMEM_LIMIT_BYTES = 40 * 1024 * 1024  # explicit scoped-VMEM limit (safe on v5e/v6e/v7x)


def _round_up(n, m):
    return ((n + m - 1) // m) * m


def _linear_fm_kernel(wT_ref, b_ref, xT_ref, oT_ref):
    """Feature-major linear: oT[j, :] = b[j] + sum_k W[j,k] * xT[k, :].

    wT_ref: (in_f, out_f) f32  VMEM  (constant tiny block = W^T)
    b_ref : (out_f,)      f32  SMEM  (scalar biases)
    xT_ref: (in_f, tile_b)     VMEM  (batch on the lane axis -> lane-dense)
    oT_ref: (out_f, tile_b)    VMEM  (lane-dense output tile)
    """
    # Full-block read, reused for every output row (f32 accumulation even for
    # narrower input dtypes).
    x = xT_ref[...].astype(jnp.float32)                       # (in_f, tile_b)
    out_f = oT_ref.shape[0]                                    # 2, fully unrolled
    for j in range(out_f):
        # Full-sublane VPU multiply: (in_f, tile_b) * (in_f, 1) lane-broadcast.
        prod = x * wT_ref[:, j:j + 1]
        # Cross-sublane reduce on the (otherwise idle) XLU + scalar bias add.
        row = jnp.sum(prod, axis=0, keepdims=True) + b_ref[j]  # (1, tile_b)
        # Direct row store — no sublane concatenation.
        oT_ref[j:j + 1, :] = row.astype(oT_ref.dtype)


def fairsquare_forward_feature_major(xT, weight, bias):
    """Preferred zero-copy contract: xT (in_f, B) -> (out_f, B)."""
    in_f, B = xT.shape
    out_f, in_f2 = weight.shape
    assert in_f == in_f2

    wT = weight.astype(jnp.float32).T        # (in_f, out_f) tiny constant VMEM block
    b = bias.astype(jnp.float32)             # (out_f,) SMEM scalars

    if B <= LANE:
        # Single full-array block: always layout-legal, no edge handling needed.
        tile_b = B
    else:
        # Lane-aligned tiles, at least 2 grid steps (so the "parallel" batch
        # axis can shard across both v7x TensorCores), capped by TILE_B_MAX.
        # Ragged last tile (B not a multiple of 128) relies on Pallas edge
        # clamping: input reads are clamped, out-of-range output writes masked.
        tile_b = min(TILE_B_MAX, _round_up((B + 1) // 2, LANE))
    num_tiles = pl.cdiv(B, tile_b)

    itemsize = jnp.dtype(xT.dtype).itemsize
    oT = pl.pallas_call(
        _linear_fm_kernel,
        out_shape=jax.ShapeDtypeStruct((out_f, B), xT.dtype),
        grid=(num_tiles,),
        in_specs=[
            pl.BlockSpec((in_f, out_f), lambda i: (0, 0)),           # W^T (constant block)
            pl.BlockSpec(memory_space=pltpu.MemorySpace.SMEM),        # bias scalars
            pl.BlockSpec((in_f, tile_b), lambda i: (0, i)),           # x^T tile (lane-dense)
        ],
        out_specs=pl.BlockSpec((out_f, tile_b), lambda i: (0, i)),    # lane-dense out tile
        compiler_params=pltpu.CompilerParams(
            dimension_semantics=("parallel",),
            vmem_limit_bytes=_VMEM_LIMIT_BYTES),
        cost_estimate=pl.CostEstimate(
            flops=2 * B * in_f * out_f,
            bytes_accessed=B * (in_f + out_f) * itemsize
                           + (in_f * out_f + out_f) * 4,
            transcendentals=0),
    )(wT, b, xT)
    return oT


def fairsquare_forward(x, weight, bias):
    """Module-compatible contract: x (B, in_f) -> (B, out_f).

    The two transposes are layout plumbing only; under jit XLA fuses them with
    the surrounding producers/consumers.  For the minimal-HBM-traffic path,
    call fairsquare_forward_feature_major directly.
    """
    return fairsquare_forward_feature_major(x.T, weight, bias).T


if __name__ == "__main__":
    # Deterministic parameters (exactly as in the module's __init__).
    weight = jnp.array(
        [[-1.0, 0.0, 0.0, 0.0, 0.0, 0.0],
         [ 1.0, 0.0, 0.0, 0.0, 0.0, 0.0]], dtype=jnp.float32)
    bias = jnp.array([0.0, 0.0], dtype=jnp.float32)

    fwd = jax.jit(fairsquare_forward)

    # Check 1: small deterministic input (batch=8, features=6) — single block.
    x = jax.random.normal(jax.random.PRNGKey(0), (8, 6), dtype=jnp.float32)
    out = jax.block_until_ready(fwd(x, weight, bias))
    ref = x @ weight.T + bias
    assert out.shape == (8, 2)
    assert jnp.allclose(out, ref, atol=1e-6, rtol=1e-6)

    # Check 2: multi-step grid path (2 lane-aligned tiles, pipelined,
    # constant-weight-block reuse).
    x2 = jax.random.normal(jax.random.PRNGKey(0), (256, 6), dtype=jnp.float32)
    out2 = jax.block_until_ready(fwd(x2, weight, bias))
    ref2 = x2 @ weight.T + bias
    assert out2.shape == (256, 2)
    assert jnp.allclose(out2, ref2, atol=1e-6, rtol=1e-6)

    print("KERNEL_OK")
</pallas_src>

<mosaic_0001>
module attributes {stable_mosaic.version = 11 : i64} {
  func.func @_linear_fm_kernel(%arg0: i32, %arg1: memref<6x2xf32, #tpu.memory_space<vmem>>, %arg2: memref<2xf32, #tpu.memory_space<smem>>, %arg3: memref<6x8xf32, #tpu.memory_space<vmem>>, %arg4: memref<2x8xf32, #tpu.memory_space<vmem>>) attributes {dimension_semantics = [#tpu.dimension_semantics<parallel>], iteration_bounds = array<i64: 1>, scalar_prefetch = 0 : i64, scratch_operands = 0 : i64, tpu.core_type = #tpu.core_type<tc>, window_params = [{pipeline_mode = #tpu.pipeline_mode<synchronous>, transform_indices = @transform_0, window_bounds = array<i64: 6, 2>}, {transform_indices = @transform_1, window_bounds = array<i64: 2>}, {transform_indices = @transform_2, window_bounds = array<i64: 6, 8>}, {transform_indices = @transform_3, window_bounds = array<i64: 2, 8>}]} {
    %c0 = arith.constant 0 : index
    %c0_0 = arith.constant 0 : index
    %0 = vector.load %arg3[%c0, %c0_0] : memref<6x8xf32, #tpu.memory_space<vmem>>, vector<6x8xf32>
    %c0_1 = arith.constant 0 : index
    %c0_2 = arith.constant 0 : index
    %1 = vector.load %arg1[%c0_1, %c0_2] : memref<6x2xf32, #tpu.memory_space<vmem>>, vector<6x1xf32>
    %2 = vector.broadcast %1 : vector<6x1xf32> to vector<6x8xf32>
    %3 = arith.mulf %0, %2 : vector<6x8xf32>
    %cst = arith.constant dense<0.000000e+00> : vector<8xf32>
    %4 = vector.multi_reduction <add>, %3, %cst [0] : vector<6x8xf32> to vector<8xf32>
    %5 = vector.shape_cast %4 : vector<8xf32> to vector<1x8xf32>
    %c0_3 = arith.constant 0 : index
    %6 = memref.load %arg2[%c0_3] : memref<2xf32, #tpu.memory_space<smem>>
    %7 = vector.broadcast %6 : f32 to vector<1x8xf32>
    %8 = arith.addf %5, %7 : vector<1x8xf32>
    %c0_4 = arith.constant 0 : index
    %c0_5 = arith.constant 0 : index
    %9 = vector.load %arg4[%c0_4, %c0_5] : memref<2x8xf32, #tpu.memory_space<vmem>>, vector<1x8xf32>
    tpu.vector_store %arg4[%c0_4, %c0_5], %8 {strides = array<i32>} : memref<2x8xf32, #tpu.memory_space<vmem>>, vector<1x8xf32>,
    %c0_6 = arith.constant 0 : index
    %c1 = arith.constant 1 : index
    %10 = vector.load %arg1[%c0_6, %c1] : memref<6x2xf32, #tpu.memory_space<vmem>>, vector<6x1xf32>
    %11 = vector.broadcast %10 : vector<6x1xf32> to vector<6x8xf32>
    %12 = arith.mulf %0, %11 : vector<6x8xf32>
    %cst_7 = arith.constant dense<0.000000e+00> : vector<8xf32>
    %13 = vector.multi_reduction <add>, %12, %cst_7 [0] : vector<6x8xf32> to vector<8xf32>
    %14 = vector.shape_cast %13 : vector<8xf32> to vector<1x8xf32>
    %c1_8 = arith.constant 1 : index
    %15 = memref.load %arg2[%c1_8] : memref<2xf32, #tpu.memory_space<smem>>
    %16 = vector.broadcast %15 : f32 to vector<1x8xf32>
    %17 = arith.addf %14, %16 : vector<1x8xf32>
    %c1_9 = arith.constant 1 : index
    %c0_10 = arith.constant 0 : index
    %18 = vector.load %arg4[%c1_9, %c0_10] : memref<2x8xf32, #tpu.memory_space<vmem>>, vector<1x8xf32>
    tpu.vector_store %arg4[%c1_9, %c0_10], %17 {strides = array<i32>} : memref<2x8xf32, #tpu.memory_space<vmem>>, vector<1x8xf32>,
    return
  }
  func.func @transform_0(%arg0: i32) -> (i32, i32) {
    %c0_i32 = arith.constant 0 : i32
    %c0_i32_0 = arith.constant 0 : i32
    %c0_i32_1 = arith.constant 0 : i32
    return %c0_i32, %c0_i32_0 : i32, i32
  }
  func.func @transform_1(%arg0: i32) -> i32 {
    %c0_i32 = arith.constant 0 : i32
    %c0_i32_0 = arith.constant 0 : i32
    return %c0_i32 : i32
  }
  func.func @transform_2(%arg0: i32) -> (i32, i32) {
    %c0_i32 = arith.constant 0 : i32
    %c0_i32_0 = arith.constant 0 : i32
    return %c0_i32, %arg0 : i32, i32
  }
  func.func @transform_3(%arg0: i32) -> (i32, i32) {
    %c0_i32 = arith.constant 0 : i32
    %c0_i32_0 = arith.constant 0 : i32
    return %c0_i32, %arg0 : i32, i32
  }
}

</mosaic_0001>

<bundles_post_ra>
// kernel: fairsquare_forward.1
= control target key start
LH: loop header
LB: loop body
LE: loop exit
PB: predicated region body
PF: predicated region fallthrough
CT: control target
= control target key end

     0   :  { %8 = vsyncpa [#allocation4], 0  ;;  %s175_s0 = inlined_call_operand.vmem [shape: f32[6,2], index: 0, kind: input, shape index: {}]   ;;  %s176_s1 = inlined_call_operand.vmem [shape: f32[2], index: 1, kind: input, shape index: {}]   ;;  %s177_s2 = inlined_call_operand.vmem [shape: f32[6,8], index: 2, kind: input, shape index: {}]   ;;  %s178_s3 = inlined_call_operand.hbm [shape: f32[2,8], index: 3, kind: output, shape index: {}]  }
   0x1   :  { %9 = vsyncpa [#allocation3], 0  ;;  %s18_s14 = sshll.u32 %s176_s1, 4  ;;  %s19_s14 = int_to_ptr.vmem [resolvable:$true] %s18_s14 }
   0x2   :  { %s89_s15 = scalar_lea.vmem %s19_s14, 16  ;;  %p94_p1 = scmp.lt.s32.totalorder %s19_s14, %s19_s14 }
   0x3   :  { %p90_p0 = scmp.ne.s32.totalorder %s19_s14, %s89_s15  ;;  %p95_p2 = scmp.lt.s32.totalorder %s89_s15, %s89_s15 }
   0x5   :  { %p96_p3 = por %p95_p2, %p94_p1 }
   0x7   :  { %p97_p4 = pnand %p96_p3, %p90_p0 }
   0x9   :  { %100 = shalt.err (!%p97_p4)
}
   0xa   :  { %s127_s16 = smov [#allocation2]  }
   0xb   :  { %21 = dma.vmem_to_smem %s19_s14, 16, %s127_s16, [#allocation4]  }
   0xc   :  { %123 = dma.done.wait [#allocation4], 16  }
   0xd   :  { %124 = vsyncadd [#allocation4], 4294967280 }
   0xe   :  { %27 = sfence }
   0xf   :  { %v29_v0 = vld [vmem:[%s175_s0] sm:$0x3f]  ;;  %v128_v1 = vmov 0   ;;  %v129_v3 = vmov 1   ;;  %vm36_vm0 = vcmask 62464   ;;  %s44_s22 = sld [smem:[#allocation2]] }
  0x10   :  { %87 = vset.pattern.permute.xlu0 %v128_v1  ;;  %v49_v2 = vld [vmem:[%s175_s0] sm:$0x3f]  ;;  %s82_s0 = sld [smem:[#allocation2 + $0x1]]  ;;  %vm47_vm1 = vcmask 57344  }
  0x11   :  { %32 = vperm.xlu0 %87, %v29_v0   ;;  %v28_v4 = vld [vmem:[%s177_s2] sm:$0x3f]  ;;  %s130_s2 = smov [#allocation5]  }
  0x12   :  { %s73_s23 = sshll.u32 %s130_s2, 4  ;;  %s74_s23 = int_to_ptr.vmem [resolvable:$true] %s73_s23 }
  0x13   :  { %s101_s24 = scalar_lea.vmem %s74_s23, 32  ;;  %p106_p6 = scmp.lt.s32.totalorder %s74_s23, %s74_s23 }
  0x14   :  { %p102_p5 = scmp.ne.s32.totalorder %s74_s23, %s101_s24  ;;  %p107_p7 = scmp.lt.s32.totalorder %s101_s24, %s101_s24 }
  0x15   :  { %88 = vset.pattern.permute.xlu0 %v129_v3  ;;  %v45_v19 = vstv %s44_s22 }
  0x16   :  { %52 = vperm.xlu0 %88, %v49_v2   ;;  %v64_v24 = vstv %s82_s0  ;;  %p108_p8 = por %p107_p7, %p106_p6 }
  0x18   :  { %p109_p9 = pnand %p108_p8, %p102_p5 }
  0x90   :  { %v33_v5 = vpop.permute.xlu0 %32 }
  0x91   :  { %v35_v6 = vmul.f32 %v33_v5, %v28_v4 }
  0x93   :  { %v37_v7 = vsel %vm36_vm0, %v35_v6, 0.0 }
  0x94   :  { %v38_v8 = vrot.slane %v37_v7, 4 }
  0x95   :  { %v53_v9 = vpop.permute.xlu0 %52 }
  0x96   :  { %v39_v10 = vadd.f32 %v38_v8, %v37_v7  ;;  %v55_v11 = vmul.f32 %v53_v9, %v28_v4 }
  0x98   :  { %v40_v12 = vrot.slane %v39_v10, 2  ;;  %v56_v13 = vsel %vm36_vm0, %v55_v11, 0.0 }
  0x99   :  { %v57_v14 = vrot.slane %v56_v13, 4 }
  0x9a   :  { %v41_v15 = vadd.f32 %v40_v12, %v39_v10 }
  0x9b   :  { %v58_v16 = vadd.f32 %v57_v14, %v56_v13 }
  0x9c   :  { %v42_v17 = vrot.slane %v41_v15, 1 }
  0x9d   :  { %v59_v18 = vrot.slane %v58_v16, 2 }
  0x9e   :  { %v43_v20 = vadd.f32 %v42_v17, %v41_v15 }
  0x9f   :  { %v60_v21 = vadd.f32 %v59_v18, %v58_v16 }
  0xa0   :  { %v46_v22 = vadd.f32 %v45_v19, %v43_v20 }
  0xa1   :  { %v61_v23 = vrot.slane %v60_v21, 1 }
  0xa2   :  { %48 = vst.msk [vmem:[#allocation5] sm:$0x1] %vm47_vm1, %v46_v22 }
  0xa3   :  { %v62_v25 = vadd.f32 %v61_v23, %v60_v21 }
  0xa5   :  { %v65_v26 = vadd.f32 %v64_v24, %v62_v25 }
  0xa7   :  { %66 = vst.msk [vmem:[#allocation5 + $0x1] sm:$0x1] %vm47_vm1, %v65_v26 }
  0xa8   :  { %112 = shalt.err (!%p109_p9)
}
  0xa9   :  { %s113_s27 = scalar_lea.hbm %s178_s3, 32 }
  0xaa   :  { %p114_p10 = scmp.ne.s32.totalorder %s178_s3, %s113_s27  ;;  %p117_p11 = scmp.lt.u32.totalorder %s113_s27, %s178_s3 }
  0xac   :  { %p119_p12 = pnand %p117_p11, %p114_p10 }
  0xae   :  { %122 = shalt.err (!%p119_p12)
}
  0xaf   :  { %76 = dma.vmem_to_hbm [thread:$0]  %s74_s23, 32, %s178_s3, [#allocation3]  }
  0xb0   :  { %125 = dma.done.wait [#allocation3], 32  }
  0xb1   :  { %126 = vsyncadd [#allocation3], 4294967264 }
  0xb2   :  { %80 = vsyncpa [#allocation3], 1 }
  0xb3   :  { %81 = vsyncpa [#allocation4], 1 }

</bundles_post_ra>
